<compile_context>
chip_gen: v7x
topology: tpu7x:2x2x1
jax: 0.10.0
libtpu: 0.0.40
codegen_flags: <defaults>
</compile_context>

<pallas_src>
import functools

import jax
import jax.numpy as jnp
from jax import lax
from jax.experimental import pallas as pl
from jax.experimental.pallas import tpu as pltpu

_EPS = 1e-6


def _round_up(v, m):
    return (v + m - 1) // m * m


def _sublane_align(itemsize):
    if itemsize >= 4:
        return 8
    if itemsize == 2:
        return 16
    return 32


@functools.lru_cache(maxsize=1)
def _vmem_budget():
    """Returns (vmem_limit_bytes, working_set_budget_bytes), generation-aware."""
    try:
        cap = int(getattr(pltpu.get_tpu_info(), "vmem_capacity_bytes"))
    except Exception:  # detection failed -> conservative defaults
        cap = 0
    if cap >= 100 * 1024 * 1024:          # v5e / v6e class (128 MiB physical VMEM)
        return 64 * 1024 * 1024, 48 * 1024 * 1024
    if cap > 0:                           # v7x class (64 MiB physical VMEM)
        return 40 * 1024 * 1024, 28 * 1024 * 1024
    return 32 * 1024 * 1024, 22 * 1024 * 1024


def _choose_tile_n(n, d, in_itemsize, out_itemsize, budget_bytes):
    """Biggest node-tile (rows) whose pass-2 working set fits the VMEM budget."""
    align = _sublane_align(in_itemsize)
    # Per-row bytes: double-buffered input + double-buffered output tiles plus
    # ~2 f32-wide temporaries (upcast / centered values).
    per_row = d * (2 * in_itemsize + 2 * out_itemsize + 8)
    tn = budget_bytes // max(per_row, 1)
    tn = (tn // align) * align
    tn = max(align, min(int(tn), 8192))
    return min(tn, _round_up(n, align))


# ----------------------------------------------------------------------------
# Fused single-pass kernel (whole x resident in VMEM).
# ----------------------------------------------------------------------------
def _fused_kernel(x_ref, o_ref, *, mode, scale, n_rows):
    x = x_ref[...].astype(jnp.float32)
    inv_n = 1.0 / n_rows
    col_mean = jnp.sum(x, axis=0, keepdims=True) * inv_n          # [1, D]
    if mode == "PN":
        xc = x - col_mean
        # Direct sum((x - mu)^2): matches the PyTorch reference, no cancellation.
        s = scale * lax.rsqrt(_EPS + jnp.sum(xc * xc) * inv_n)
        o_ref[...] = (xc * s).astype(o_ref.dtype)
    elif mode == "PN-SI":
        xc = x - col_mean
        row_sq = jnp.sum(xc * xc, axis=1, keepdims=True)           # [N, 1]
        o_ref[...] = (xc * (scale * lax.rsqrt(_EPS + row_sq))).astype(o_ref.dtype)
    else:  # PN-SCS
        row_sq = jnp.sum(x * x, axis=1, keepdims=True)             # [N, 1]
        o_ref[...] = (x * (scale * lax.rsqrt(_EPS + row_sq))
                      - col_mean).astype(o_ref.dtype)


# ----------------------------------------------------------------------------
# Tiled pass 1: column statistics, accumulated across node tiles.
# Grid (nsplit, tiles_per_split): leading axis is "parallel" (megacore-sharded),
# trailing axis is the reduction.  Rows >= n_rows (ragged last tile, or a
# clamped redundant tile) are masked to zero so no padding is required.
# ----------------------------------------------------------------------------
def _stats_kernel(x_ref, colsum_ref, colsqsum_ref, *,
                  tile_n, n_rows, tiles_per_split):
    c = pl.program_id(0)
    i = pl.program_id(1)

    @pl.when(i == 0)
    def _():
        colsum_ref[...] = jnp.zeros_like(colsum_ref)
        colsqsum_ref[...] = jnp.zeros_like(colsqsum_ref)

    row0 = (c * tiles_per_split + i) * tile_n
    rows = row0 + lax.broadcasted_iota(jnp.int32, x_ref.shape, 0)
    x = jnp.where(rows < n_rows, x_ref[...].astype(jnp.float32), 0.0)

    colsum_ref[...] += jnp.sum(x, axis=0, keepdims=True)[None]     # [1, 1, D]
    colsqsum_ref[...] += jnp.sum(x * x, axis=0, keepdims=True)[None]


# ----------------------------------------------------------------------------
# Tiled pass 2: normalization.  The scalar glue (col_mean, PN scalar s) is
# recomputed per tile from the tiny stats blocks -- negligible VALU/XLU work
# hidden under the HBM DMA.
# ----------------------------------------------------------------------------
def _pn_normalize_kernel(colsum_ref, colsqsum_ref, x_ref, o_ref, *, scale, n_rows):
    inv_n = 1.0 / n_rows
    col_mean = jnp.sum(colsum_ref[...], axis=0) * inv_n            # [1, D]
    sumsq = jnp.sum(colsqsum_ref[...])
    # sum_i ||x_i - mu||^2 = sum_i ||x_i||^2 - N*||mu||^2.  The max(...,0) only
    # triggers on FP cancellation residue (benign deviation from the reference).
    ss_centered = jnp.maximum(sumsq - n_rows * jnp.sum(col_mean * col_mean), 0.0)
    s = scale * lax.rsqrt(_EPS + ss_centered * inv_n)
    x = x_ref[...].astype(jnp.float32)
    o_ref[...] = ((x - col_mean) * s).astype(o_ref.dtype)


def _pnsi_normalize_kernel(colsum_ref, x_ref, o_ref, *, scale, n_rows):
    col_mean = jnp.sum(colsum_ref[...], axis=0) * (1.0 / n_rows)   # [1, D]
    x = x_ref[...].astype(jnp.float32)
    xc = x - col_mean
    row_sq = jnp.sum(xc * xc, axis=1, keepdims=True)               # [TN, 1]
    o_ref[...] = (xc * (scale * lax.rsqrt(_EPS + row_sq))).astype(o_ref.dtype)


def _pnscs_normalize_kernel(colsum_ref, x_ref, o_ref, *, scale, n_rows):
    col_mean = jnp.sum(colsum_ref[...], axis=0) * (1.0 / n_rows)   # [1, D]
    x = x_ref[...].astype(jnp.float32)
    row_sq = jnp.sum(x * x, axis=1, keepdims=True)                 # [TN, 1]
    o_ref[...] = (x * (scale * lax.rsqrt(_EPS + row_sq))
                  - col_mean).astype(o_ref.dtype)


# ----------------------------------------------------------------------------
# Wrapper
# ----------------------------------------------------------------------------
@functools.partial(jax.jit, static_argnames=("mode", "scale", "tile_n", "use_fused"))
def pairnorm(x, mode="PN", scale=1.0, tile_n=None, use_fused=None):
    """PairNorm forward.  x: [N, D]."""
    assert mode in ("None", "PN", "PN-SI", "PN-SCS")
    assert x.ndim == 2
    if mode == "None":
        return x

    N, D = x.shape
    out_dtype = x.dtype
    in_itemsize = x.dtype.itemsize
    out_itemsize = jnp.dtype(out_dtype).itemsize
    scale = float(scale)

    vmem_limit, budget = _vmem_budget()

    # ---- fused single-pass fast path (x + temps + out fit in VMEM) ----------
    if use_fused is None:
        use_fused = N * D * (in_itemsize + out_itemsize + 12) <= budget
    if use_fused:
        kern = functools.partial(_fused_kernel, mode=mode, scale=scale, n_rows=N)
        return pl.pallas_call(
            kern,
            out_shape=jax.ShapeDtypeStruct((N, D), out_dtype),
            grid=(1,),
            in_specs=[pl.BlockSpec((N, D), lambda i: (0, 0))],
            out_specs=pl.BlockSpec((N, D), lambda i: (0, 0)),
            compiler_params=pltpu.CompilerParams(
                dimension_semantics=("arbitrary",),
                vmem_limit_bytes=vmem_limit),
        )(x)

    # ---- tiled two-pass path -------------------------------------------------
    align = _sublane_align(in_itemsize)
    if tile_n is None:
        TN = _choose_tile_n(N, D, in_itemsize, out_itemsize, budget)
    else:
        TN = max(align, _round_up(int(tile_n), align))
        TN = min(TN, _round_up(N, align))
    n_tiles = pl.cdiv(N, TN)

    # Two independent accumulator rows so v7x megacore can split the reduction
    # across both TensorCores (harmless / near-free on 1-TC v5e/v6e).
    nsplit = 2 if n_tiles >= 2 else 1
    tiles_per_split = pl.cdiv(n_tiles, nsplit)

    stats = functools.partial(_stats_kernel, tile_n=TN, n_rows=N,
                              tiles_per_split=tiles_per_split)

    def x_stats_map(c, i):
        # Clamp possible overhang tile of the split grid to the last real block;
        # its rows are >= N so the in-kernel mask zeroes its contribution.
        return (jnp.minimum(c * tiles_per_split + i, n_tiles - 1), 0)

    col_sum, col_sqsum = pl.pallas_call(
        stats,
        out_shape=(jax.ShapeDtypeStruct((nsplit, 1, D), jnp.float32),
                   jax.ShapeDtypeStruct((nsplit, 1, D), jnp.float32)),
        grid=(nsplit, tiles_per_split),
        in_specs=[pl.BlockSpec((TN, D), x_stats_map)],
        out_specs=(pl.BlockSpec((1, 1, D), lambda c, i: (c, 0, 0)),
                   pl.BlockSpec((1, 1, D), lambda c, i: (c, 0, 0))),
        compiler_params=pltpu.CompilerParams(
            dimension_semantics=("parallel", "arbitrary"),
            vmem_limit_bytes=vmem_limit),
    )(x)

    x_spec = pl.BlockSpec((TN, D), lambda i: (i, 0))
    o_spec = pl.BlockSpec((TN, D), lambda i: (i, 0))
    cs_spec = pl.BlockSpec((nsplit, 1, D), lambda i: (0, 0, 0))
    norm_params = pltpu.CompilerParams(
        dimension_semantics=("parallel",), vmem_limit_bytes=vmem_limit)

    if mode == "PN":
        kern = functools.partial(_pn_normalize_kernel, scale=scale, n_rows=N)
        out = pl.pallas_call(
            kern,
            out_shape=jax.ShapeDtypeStruct((N, D), out_dtype),
            grid=(n_tiles,),
            in_specs=[cs_spec, cs_spec, x_spec],
            out_specs=o_spec,
            compiler_params=norm_params,
        )(col_sum, col_sqsum, x)
    else:
        kern = _pnsi_normalize_kernel if mode == "PN-SI" else _pnscs_normalize_kernel
        kern = functools.partial(kern, scale=scale, n_rows=N)
        out = pl.pallas_call(
            kern,
            out_shape=jax.ShapeDtypeStruct((N, D), out_dtype),
            grid=(n_tiles,),
            in_specs=[cs_spec, x_spec],
            out_specs=o_spec,
            compiler_params=norm_params,
        )(col_sum, x)
    return out


# ----------------------------------------------------------------------------
# Pure-JAX reference mirroring the PyTorch forward exactly.
# ----------------------------------------------------------------------------
def _pairnorm_ref(x, mode="PN", scale=1.0):
    if mode == "None":
        return x
    x = x.astype(jnp.float32)
    col_mean = x.mean(axis=0)
    if mode == "PN":
        x = x - col_mean
        rownorm_mean = jnp.sqrt(1e-6 + (x ** 2).sum(axis=1).mean())
        x = scale * x / rownorm_mean
    if mode == "PN-SI":
        x = x - col_mean
        rownorm_individual = jnp.sqrt(1e-6 + (x ** 2).sum(axis=1, keepdims=True))
        x = scale * x / rownorm_individual
    if mode == "PN-SCS":
        rownorm_individual = jnp.sqrt(1e-6 + (x ** 2).sum(axis=1, keepdims=True))
        x = scale * x / rownorm_individual - col_mean
    return x


if __name__ == "__main__":
    key = jax.random.PRNGKey(0)
    k1, k2 = jax.random.split(key)

    # Case 1: divisible shapes -> exercises the multi-tile two-pass path
    #         (with the 2-way split stats reduction) and the fused fast path.
    x1 = jax.random.normal(k1, (192, 128), dtype=jnp.float32)
    # Case 2: ragged N and D -> exercises row masking / partial last tile and
    #         non-128 lane widths without any padding.
    x2 = jax.random.normal(k2, (100, 72), dtype=jnp.float32)

    cases = [
        (x1, dict(tile_n=64, use_fused=False)),   # tiled two-pass, 3 tiles, split stats
        (x1, dict(use_fused=True)),               # fused VMEM-resident path
        (x2, dict(tile_n=32, use_fused=False)),   # ragged tiled path
        (x2, dict()),                             # auto dispatch (fast path)
    ]

    ok = True
    for x, kw in cases:
        for mode in ("PN", "PN-SI", "PN-SCS", "None"):
            out = jax.block_until_ready(pairnorm(x, mode=mode, scale=1.0, **kw))
            ref = _pairnorm_ref(x, mode=mode, scale=1.0)
            if not jnp.allclose(out, ref, atol=1e-5, rtol=1e-5):
                ok = False
                print("MISMATCH mode=%s shape=%s kwargs=%s max_err=%e" %
                      (mode, x.shape, kw, float(jnp.max(jnp.abs(out - ref)))))

    if ok:
        print("KERNEL_OK")
</pallas_src>

<mosaic_0001>
module attributes {stable_mosaic.version = 11 : i64} {
  func.func @_pn_normalize_kernel(%arg0: i32, %arg1: memref<2x1x128xf32, #tpu.memory_space<vmem>>, %arg2: memref<2x1x128xf32, #tpu.memory_space<vmem>>, %arg3: memref<64x128xf32, #tpu.memory_space<vmem>>, %arg4: memref<64x128xf32, #tpu.memory_space<vmem>>) attributes {dimension_semantics = [#tpu.dimension_semantics<parallel>], iteration_bounds = array<i64: 3>, scalar_prefetch = 0 : i64, scratch_operands = 0 : i64, tpu.core_type = #tpu.core_type<tc>, window_params = [{pipeline_mode = #tpu.pipeline_mode<synchronous>, transform_indices = @transform_0, window_bounds = array<i64: 2, 1, 128>}, {pipeline_mode = #tpu.pipeline_mode<synchronous>, transform_indices = @transform_1, window_bounds = array<i64: 2, 1, 128>}, {transform_indices = @transform_2, window_bounds = array<i64: 64, 128>}, {transform_indices = @transform_3, window_bounds = array<i64: 64, 128>}]} {
    %c0 = arith.constant 0 : index
    %c0_0 = arith.constant 0 : index
    %c0_1 = arith.constant 0 : index
    %0 = vector.load %arg1[%c0, %c0_0, %c0_1] : memref<2x1x128xf32, #tpu.memory_space<vmem>>, vector<2x1x128xf32>
    %cst = arith.constant dense<0.000000e+00> : vector<1x128xf32>
    %1 = vector.multi_reduction <add>, %0, %cst [0] : vector<2x1x128xf32> to vector<1x128xf32>
    %cst_2 = arith.constant 0.00520833349 : f32
    %2 = vector.broadcast %cst_2 : f32 to vector<1x128xf32>
    %3 = arith.mulf %1, %2 : vector<1x128xf32>
    %c0_3 = arith.constant 0 : index
    %c0_4 = arith.constant 0 : index
    %c0_5 = arith.constant 0 : index
    %4 = vector.load %arg2[%c0_3, %c0_4, %c0_5] : memref<2x1x128xf32, #tpu.memory_space<vmem>>, vector<2x1x128xf32>
    %5 = vector.shape_cast %4 : vector<2x1x128xf32> to vector<1x2x1x128xf32>
    %cst_6 = arith.constant dense<0.000000e+00> : vector<1xf32>
    %6 = vector.multi_reduction <add>, %5, %cst_6 [1, 2, 3] : vector<1x2x1x128xf32> to vector<1xf32>
    %7 = vector.shape_cast %6 : vector<1xf32> to vector<1x1x1x1xf32>
    %8 = vector.extract %7[0, 0, 0, 0] : f32 from vector<1x1x1x1xf32>
    %9 = arith.mulf %3, %3 : vector<1x128xf32>
    %10 = vector.shape_cast %9 : vector<1x128xf32> to vector<1x1x128xf32>
    %cst_7 = arith.constant dense<0.000000e+00> : vector<1xf32>
    %11 = vector.multi_reduction <add>, %10, %cst_7 [1, 2] : vector<1x1x128xf32> to vector<1xf32>
    %12 = vector.shape_cast %11 : vector<1xf32> to vector<1x1x1xf32>
    %13 = vector.extract %12[0, 0, 0] : f32 from vector<1x1x1xf32>
    %cst_8 = arith.constant 1.920000e+02 : f32
    %14 = arith.mulf %cst_8, %13 : f32
    %15 = arith.subf %8, %14 : f32
    %cst_9 = arith.constant 0.000000e+00 : f32
    %16 = arith.maximumf %15, %cst_9 : f32
    %cst_10 = arith.constant 0.00520833349 : f32
    %17 = arith.mulf %16, %cst_10 : f32
    %cst_11 = arith.constant 9.99999997E-7 : f32
    %18 = arith.addf %cst_11, %17 : f32
    %19 = math.rsqrt %18 : f32
    %cst_12 = arith.constant 1.000000e+00 : f32
    %20 = arith.mulf %cst_12, %19 : f32
    %c0_13 = arith.constant 0 : index
    %c0_14 = arith.constant 0 : index
    %21 = vector.load %arg3[%c0_13, %c0_14] : memref<64x128xf32, #tpu.memory_space<vmem>>, vector<64x128xf32>
    %22 = vector.broadcast %3 : vector<1x128xf32> to vector<64x128xf32>
    %23 = arith.subf %21, %22 : vector<64x128xf32>
    %24 = vector.broadcast %20 : f32 to vector<64x128xf32>
    %25 = arith.mulf %23, %24 : vector<64x128xf32>
    %c0_15 = arith.constant 0 : index
    %c0_16 = arith.constant 0 : index
    %26 = vector.load %arg4[%c0_15, %c0_16] : memref<64x128xf32, #tpu.memory_space<vmem>>, vector<64x128xf32>
    tpu.vector_store %arg4[%c0_15, %c0_16], %25 {strides = array<i32>} : memref<64x128xf32, #tpu.memory_space<vmem>>, vector<64x128xf32>,
    return
  }
  func.func @transform_0(%arg0: i32) -> (i32, i32, i32) {
    %c0_i32 = arith.constant 0 : i32
    %c0_i32_0 = arith.constant 0 : i32
    %c0_i32_1 = arith.constant 0 : i32
    %c0_i32_2 = arith.constant 0 : i32
    return %c0_i32, %c0_i32_0, %c0_i32_1 : i32, i32, i32
  }
  func.func @transform_1(%arg0: i32) -> (i32, i32, i32) {
    %c0_i32 = arith.constant 0 : i32
    %c0_i32_0 = arith.constant 0 : i32
    %c0_i32_1 = arith.constant 0 : i32
    %c0_i32_2 = arith.constant 0 : i32
    return %c0_i32, %c0_i32_0, %c0_i32_1 : i32, i32, i32
  }
  func.func @transform_2(%arg0: i32) -> (i32, i32) {
    %c0_i32 = arith.constant 0 : i32
    %c0_i32_0 = arith.constant 0 : i32
    return %arg0, %c0_i32 : i32, i32
  }
  func.func @transform_3(%arg0: i32) -> (i32, i32) {
    %c0_i32 = arith.constant 0 : i32
    %c0_i32_0 = arith.constant 0 : i32
    return %arg0, %c0_i32 : i32, i32
  }
}

module attributes {stable_mosaic.version = 11 : i64} {
  func.func @_stats_kernel(%arg0: i32, %arg1: i32, %arg2: memref<64x128xf32, #tpu.memory_space<vmem>>, %arg3: memref<1x1x128xf32, #tpu.memory_space<vmem>>, %arg4: memref<1x1x128xf32, #tpu.memory_space<vmem>>) attributes {dimension_semantics = [#tpu.dimension_semantics<parallel>, #tpu.dimension_semantics<arbitrary>], iteration_bounds = array<i64: 2, 2>, scalar_prefetch = 0 : i64, scratch_operands = 0 : i64, tpu.core_type = #tpu.core_type<tc>, window_params = [{transform_indices = @transform_0, window_bounds = array<i64: 64, 128>}, {transform_indices = @transform_1, window_bounds = array<i64: 1, 1, 128>}, {transform_indices = @transform_2, window_bounds = array<i64: 1, 1, 128>}]} {
    %c0_i32 = arith.constant 0 : i32
    %0 = arith.cmpi eq, %arg1, %c0_i32 : i32
    %1 = arith.extui %0 : i1 to i32
    %c0_i32_0 = arith.constant 0 : i32
    %2 = arith.cmpi ne, %1, %c0_i32_0 : i32
    scf.if %2 {
      %cst_16 = arith.constant 0.000000e+00 : f32
      %27 = vector.broadcast %cst_16 : f32 to vector<1x1x128xf32>
      %c0_17 = arith.constant 0 : index
      %c0_18 = arith.constant 0 : index
      %c0_19 = arith.constant 0 : index
      %28 = vector.load %arg3[%c0_17, %c0_18, %c0_19] : memref<1x1x128xf32, #tpu.memory_space<vmem>>, vector<1x1x128xf32>
      tpu.vector_store %arg3[%c0_17, %c0_18, %c0_19], %27 {strides = array<i32>} : memref<1x1x128xf32, #tpu.memory_space<vmem>>, vector<1x1x128xf32>,
      %cst_20 = arith.constant 0.000000e+00 : f32
      %29 = vector.broadcast %cst_20 : f32 to vector<1x1x128xf32>
      %c0_21 = arith.constant 0 : index
      %c0_22 = arith.constant 0 : index
      %c0_23 = arith.constant 0 : index
      %30 = vector.load %arg4[%c0_21, %c0_22, %c0_23] : memref<1x1x128xf32, #tpu.memory_space<vmem>>, vector<1x1x128xf32>
      tpu.vector_store %arg4[%c0_21, %c0_22, %c0_23], %29 {strides = array<i32>} : memref<1x1x128xf32, #tpu.memory_space<vmem>>, vector<1x1x128xf32>,
    } else {
    }
    %c2_i32 = arith.constant 2 : i32
    %3 = arith.muli %arg0, %c2_i32 : i32
    %4 = arith.addi %3, %arg1 : i32
    %c64_i32 = arith.constant 64 : i32
    %5 = arith.muli %4, %c64_i32 : i32
    %6 = tpu.iota {dimensions = array<i32: 0>} : vector<64x128xi32>
    %7 = vector.broadcast %5 : i32 to vector<64x128xi32>
    %8 = arith.addi %7, %6 : vector<64x128xi32>
    %c192_i32 = arith.constant 192 : i32
    %9 = vector.broadcast %c192_i32 : i32 to vector<64x128xi32>
    %10 = arith.cmpi slt, %8, %9 : vector<64x128xi32>
    %c0 = arith.constant 0 : index
    %c0_1 = arith.constant 0 : index
    %11 = vector.load %arg2[%c0, %c0_1] : memref<64x128xf32, #tpu.memory_space<vmem>>, vector<64x128xf32>
    %cst = arith.constant 0.000000e+00 : f32
    %12 = vector.broadcast %cst : f32 to vector<64x128xf32>
    %13 = arith.select %10, %11, %12 : vector<64x128xi1>, vector<64x128xf32>
    %c0_2 = arith.constant 0 : index
    %c0_3 = arith.constant 0 : index
    %c0_4 = arith.constant 0 : index
    %14 = vector.load %arg3[%c0_2, %c0_3, %c0_4] : memref<1x1x128xf32, #tpu.memory_space<vmem>>, vector<1x1x128xf32>
    %cst_5 = arith.constant dense<0.000000e+00> : vector<128xf32>
    %15 = vector.multi_reduction <add>, %13, %cst_5 [0] : vector<64x128xf32> to vector<128xf32>
    %16 = vector.shape_cast %15 : vector<128xf32> to vector<1x128xf32>
    %17 = vector.shape_cast %16 : vector<1x128xf32> to vector<1x1x128xf32>
    %18 = arith.addf %14, %17 : vector<1x1x128xf32>
    %c0_6 = arith.constant 0 : index
    %c0_7 = arith.constant 0 : index
    %c0_8 = arith.constant 0 : index
    %19 = vector.load %arg3[%c0_6, %c0_7, %c0_8] : memref<1x1x128xf32, #tpu.memory_space<vmem>>, vector<1x1x128xf32>
    tpu.vector_store %arg3[%c0_6, %c0_7, %c0_8], %18 {strides = array<i32>} : memref<1x1x128xf32, #tpu.memory_space<vmem>>, vector<1x1x128xf32>,
    %c0_9 = arith.constant 0 : index
    %c0_10 = arith.constant 0 : index
    %c0_11 = arith.constant 0 : index
    %20 = vector.load %arg4[%c0_9, %c0_10, %c0_11] : memref<1x1x128xf32, #tpu.memory_space<vmem>>, vector<1x1x128xf32>
    %21 = arith.mulf %13, %13 : vector<64x128xf32>
    %cst_12 = arith.constant dense<0.000000e+00> : vector<128xf32>
    %22 = vector.multi_reduction <add>, %21, %cst_12 [0] : vector<64x128xf32> to vector<128xf32>
    %23 = vector.shape_cast %22 : vector<128xf32> to vector<1x128xf32>
    %24 = vector.shape_cast %23 : vector<1x128xf32> to vector<1x1x128xf32>
    %25 = arith.addf %20, %24 : vector<1x1x128xf32>
    %c0_13 = arith.constant 0 : index
    %c0_14 = arith.constant 0 : index
    %c0_15 = arith.constant 0 : index
    %26 = vector.load %arg4[%c0_13, %c0_14, %c0_15] : memref<1x1x128xf32, #tpu.memory_space<vmem>>, vector<1x1x128xf32>
    tpu.vector_store %arg4[%c0_13, %c0_14, %c0_15], %25 {strides = array<i32>} : memref<1x1x128xf32, #tpu.memory_space<vmem>>, vector<1x1x128xf32>,
    return
  }
  func.func @transform_0(%arg0: i32, %arg1: i32) -> (i32, i32) {
    %c2_i32 = arith.constant 2 : i32
    %0 = arith.muli %arg0, %c2_i32 : i32
    %1 = arith.addi %0, %arg1 : i32
    %c2_i32_0 = arith.constant 2 : i32
    %2 = arith.minsi %1, %c2_i32_0 : i32
    %c0_i32 = arith.constant 0 : i32
    %c0_i32_1 = arith.constant 0 : i32
    return %2, %c0_i32 : i32, i32
  }
  func.func @transform_1(%arg0: i32, %arg1: i32) -> (i32, i32, i32) {
    %c0_i32 = arith.constant 0 : i32
    %c0_i32_0 = arith.constant 0 : i32
    %c0_i32_1 = arith.constant 0 : i32
    return %arg0, %c0_i32, %c0_i32_0 : i32, i32, i32
  }
  func.func @transform_2(%arg0: i32, %arg1: i32) -> (i32, i32, i32) {
    %c0_i32 = arith.constant 0 : i32
    %c0_i32_0 = arith.constant 0 : i32
    %c0_i32_1 = arith.constant 0 : i32
    return %arg0, %c0_i32, %c0_i32_0 : i32, i32, i32
  }
}

</mosaic_0001>

<bundles_post_ra>
// kernel: pairnorm.3
= control target key start
LH: loop header
LB: loop body
LE: loop exit
PB: predicated region body
PF: predicated region fallthrough
CT: control target
= control target key end

     0   :  { %8 = vsyncpa [#allocation3], 0  ;;  %s594_s0 = inlined_call_operand.vmem [shape: f32[2,1,128], index: 0, kind: input, shape index: {}]   ;;  %s595_s1 = inlined_call_operand.vmem [shape: f32[2,1,128], index: 1, kind: input, shape index: {}]   ;;  %s596_s2 = inlined_call_operand.vmem [shape: f32[192,128], index: 2, kind: input, shape index: {}]   ;;  %s597_s3 = inlined_call_operand.hbm [shape: f32[192,128], index: 3, kind: output, shape index: {}]  }
   0x1   :  { %10 = vsyncpa [#allocation3 + $0x1], 0  ;;  %s476_s12 = smov 0   ;;  %s478_s13 = smov 0  }
   0x2   :  { %s480_s14 = smov 0   ;;  %s482_s15 = smov 0  }
   0x3 LB: > { %s497_s16 = sadd.s32 4294967295, %s450_s15   ;;  %s325_s17 = sadd.s32 4294967294, %s450_s15   ;;  %s450_s15 = sphi %s482_s15, %s603_s15   ;;  %s446_s14 = sphi %s480_s14, %s602_s14   ;;  %s442_s13 = sphi %s478_s13, %s601_s13   ;;  %s438_s12 = sphi %s476_s12, %s600_s12  }
   0x4   : > { %s501_s18 = sadd.s32 1, %s450_s15   ;;  %s91_s19 = sadd.s32 1, %s446_s14 }
   0x5   : > { %s88_s20 = ssub.s32 %s450_s15, %s501_s18  ;;  %p101_p0 = scmp.ne.s32.totalorder %s446_s14, %s442_s13 }
   0x6   : > { %p89_p1 = scmp.eq.s32.totalorder %s88_s20, 0  ;;  %p102_p2 = scmp.eq.s32.totalorder %s497_s16, 2 }
   0x7   : > { %p107_p3 = scmp.ne.s32.totalorder %s442_s13, %s438_s12  ;;  %p108_p4 = scmp.eq.s32.totalorder %s325_s17, 2 }
   0x8   : > { %s512_s21 = scalar_select %p89_p1, %s446_s14, %s91_s19  }
   0x9   : > { %p514_p5 = por %p102_p2, %p101_p0  ;;  %p518_p6 = por %p108_p4, %p107_p3 }
   0xa   : > { %p328_p7 = scmp.ge.s32.totalorder %s450_s15, 1  ;;  %p141_p8 = scmp.lt.s32.totalorder %s450_s15, 4 }
   0xc   : > { %p142_p9 = pnand %p328_p7, %p141_p8 }
   0xd   : > { %vm174_vm0 = vcmask (!%p142_p9), 1040384   ;;  %v179_v0 = vld [vmem:[%s595_s1] sm:$0x1] (!%p142_p9)  ;;  %v180_v1 = vld [vmem:[%s595_s1 + $0x1] sm:$0x1] (!%p142_p9)  ;;  %s452_s9 = smov (!%p142_p9), 0.0   ;;  %v220_v29 = vlaneseq (!%p142_p9) }
   0xe   : > { %145 = sbr.rel (%p142_p9) target bundleno = 320 (0x140), region = 32  ;;  %v181_v2 = vsel (!%p142_p9), %vm174_vm0, %v179_v0, 0.0  ;;  %v182_v3 = vsel (!%p142_p9), %vm174_vm0, %v180_v1, 0.0  ;;  %v172_v4 = vld [vmem:[%s594_s0] sm:$0x1] (!%p142_p9)  ;;  %s330_s19 = sshll.u32 (!%p142_p9), %s497_s16, 3 }
   0xf   : > { %v173_v5 = vld [vmem:[%s594_s0 + $0x1] sm:$0x1] (!%p142_p9)  ;;  %v183_v6 = vadd.f32 (!%p142_p9), %v182_v3, %v181_v2  ;;  %v175_v7 = vsel (!%p142_p9), %vm174_vm0, %v172_v4, 0.0  ;;  %p166_p10 = scmp.lt.s32.totalorder (!%p142_p9), %s330_s19, 23  ;;  %v221_v30 = vshrl.u32 (!%p142_p9), %v220_v29, 7  ;;  %s162_s24 = sand.u32 (!%p142_p9), 1, %s442_s13  }
  0x10   : > { %v176_v8 = vsel (!%p142_p9), %vm174_vm0, %v173_v5, 0.0  ;;  %s329_s28 = sshll.u32 (!%p142_p9), %s162_s24, 6  ;;  %s337_s29 = sshll.u32 (!%p142_p9), %s497_s16, 10 }
  0x11   : > { %v177_v9 = vadd.f32 (!%p142_p9), %v176_v8, %v175_v7  ;;  %184 = vadd.xlane.f32.xlu0 (!%p142_p9), %v183_v6  ;;  %v222_v31 = vsub.s32 (!%p142_p9), 0, %v221_v30  ;;  %s164_s30 = scalar_lea.vmem (!%p142_p9), [#allocation2], %s329_s28  ;;  %s553_s16 = scalar_lea.sflag (!%p142_p9), [#allocation3], %s162_s24 }
  0x12   : > { %s263_s4 = sshll.u32 (!%p142_p9), %s164_s30, 4  ;;  %s549_s4 = int_to_ptr.vmem [resolvable:$true] %s263_s4 }
  0x13   : > { %v178_v10 = vmul.f32 (!%p142_p9), 0.0052083335, %v177_v9 }
  0x15   : > { %v193_v11 = vmul.f32 %v178_v10, %v178_v10  ;;  %s605_s19 = smov (!%p166_p10, %s330_s19), 23  ;;  %v223_v32 = vrot.slane %v178_v10, %v222_v31 }
  0x16   : > { %s331_s20 = sshll.u32 %s605_s19, 3 }
  0x17   : > { %v194_v12 = vsel %vm174_vm0, %v193_v11, 0.0  ;;  %s169_s27 = scalar_lea.vmem %s596_s2, %s331_s20 }
  0x18   : > { %195 = vadd.xlane.f32.xlu0 %v194_v12  ;;  %v212_v33 = vld [vmem:[%s169_s27] sm:$0xff]  ;;  %v213_v34 = vld [vmem:[%s169_s27 + $0x8] sm:$0xff]  ;;  %v214_v35 = vld [vmem:[%s169_s27 + $0x10] sm:$0xff] }
  0x19   : > { %v215_v36 = vld [vmem:[%s169_s27 + $0x18] sm:$0xff]  ;;  %v216_v37 = vld [vmem:[%s169_s27 + $0x20] sm:$0xff]  ;;  %v217_v38 = vld [vmem:[%s169_s27 + $0x28] sm:$0xff]  ;;  %v224_v41 = vsub.f32 %v212_v33, %v223_v32  ;;  %v225_v42 = vsub.f32 %v213_v34, %v223_v32  ;;  %v226_v43 = vsub.f32 %v214_v35, %v223_v32 }
  0x1a   : > { %v218_v39 = vld [vmem:[%s169_s27 + $0x30] sm:$0xff]  ;;  %v219_v40 = vld [vmem:[%s169_s27 + $0x38] sm:$0xff]  ;;  %v227_v44 = vsub.f32 %v215_v36, %v223_v32  ;;  %v228_v45 = vsub.f32 %v216_v37, %v223_v32  ;;  %v229_v46 = vsub.f32 %v217_v38, %v223_v32 }
  0x1b   : > { %v230_v47 = vsub.f32 %v218_v39, %v223_v32  ;;  %v231_v48 = vsub.f32 %v219_v40, %v223_v32 }
  0x9e   : > { %v185_v13 = vpop.xlane.xlu0 %184 }
  0x9f   : > { %v186_v14 = vrot.slane %v185_v13, 4 }
  0xa1   : > { %v187_v15 = vadd.f32 %v186_v14, %v185_v13 }
  0xa3   : > { %v188_v16 = vrot.slane %v187_v15, 2 }
  0xa5   : > { %v196_v17 = vpop.xlane.xlu0 %195  ;;  %v189_v19 = vadd.f32 %v188_v16, %v187_v15 }
  0xa6   : > { %v197_v18 = vrot.slane %v196_v17, 4 }
  0xa7   : > { %v190_v21 = vrot.slane %v189_v19, 1 }
  0xa8   : > { %v198_v20 = vadd.f32 %v197_v18, %v196_v17 }
  0xa9   : > { %v191_v23 = vadd.f32 %v190_v21, %v189_v19 }
  0xaa   : > { %v199_v22 = vrot.slane %v198_v20, 2 }
  0xab   : > { %338 = vpush %v191_v23 }
  0xac   : > { %v200_v24 = vadd.f32 %v199_v22, %v198_v20 }
  0xae   : > { %v201_v25 = vrot.slane %v200_v24, 1 }
  0xb0   : > { %v202_v26 = vadd.f32 %v201_v25, %v200_v24 }
  0xb2   : > { %340 = vpush %v202_v26 }
  0xdc   : > { %s339_s5 = spop %338 }
  0xe3   : > { %s341_s6 = spop %340 }
  0xe4   : > { %s204_s7 = smul.f32 192.0, %s341_s6 }
  0xe6   : > { %s205_s8 = ssub.f32 %s339_s5, %s204_s7 }
  0xe8   : > { %s206_s10 = smax.f32 %s452_s9, %s205_s8  ;;  %s547_s8 = scalar_lea.hbm %s597_s3, %s337_s29 }
  0xe9   : > { %s207_s11 = smul.f32 0.0052083335, %s206_s10  ;;  %s388_s9 = scalar_lea.vmem %s549_s4, 1024 }
  0xea   : > { %p389_p11 = scmp.ne.s32.totalorder %s549_s4, %s388_s9  ;;  %s453_s10 = smov [#allocation2]  }
  0xeb   : > { %s208_s17 = sadd.f32 1e-06, %s207_s11  ;;  %s392_s11 = sshll.u32 %s453_s10, 4  ;;  %s393_s11 = int_to_ptr.vmem [resolvable:$false] %s392_s11 }
  0xec   : > { %p390_p12 = pnand %p389_p11, %p514_p5  ;;  %p395_p0 = scmp.lt.s32.totalorder %s549_s4, %s393_s11 }
  0xed   : > { %v209_v27 = vstv %s208_s17  ;;  %s394_s17 = scalar_lea.vmem %s393_s11, 2048 }
  0xee   : > { %386 = vrsqrt.f32 %v209_v27  ;;  %p391_p13 = pneg %p390_p12  ;;  %p396_p1 = scmp.lt.s32.totalorder %s394_s17, %s388_s9 }
  0xf0   : > { %p397_p2 = por %p396_p1, %p395_p0 }
  0xf2   : > { %p398_p3 = pnand %p397_p2, %p391_p13 }
  0xf8   : > { %v387_v28 = vpop.eup %386 }
  0xf9   : > { %342 = vpush %v387_v28 }
 0x12a   : > { %s343_s5 = spop %342 }
 0x12b   : > { %v232_v49 = vstv %s343_s5 }
 0x12c   : > { %v233_v50 = vmul.f32 %v232_v49, %v224_v41  ;;  %v234_v51 = vmul.f32 %v232_v49, %v225_v42  ;;  %v235_v52 = vmul.f32 %v232_v49, %v226_v43  ;;  %v236_v53 = vmul.f32 %v232_v49, %v227_v44 }
 0x12d   : > { %v237_v54 = vmul.f32 %v232_v49, %v228_v45  ;;  %v238_v55 = vmul.f32 %v232_v49, %v229_v46  ;;  %v239_v56 = vmul.f32 %v232_v49, %v230_v47  ;;  %v240_v57 = vmul.f32 %v232_v49, %v231_v48 }
 0x12e   : > { %241 = vst [vmem:[%s164_s30] sm:$0xff] %v233_v50  ;;  %242 = vst [vmem:[%s164_s30 + $0x8] sm:$0xff] %v234_v51 }
 0x12f   : > { %243 = vst [vmem:[%s164_s30 + $0x10] sm:$0xff] %v235_v52  ;;  %244 = vst [vmem:[%s164_s30 + $0x18] sm:$0xff] %v236_v53 }
 0x130   : > { %245 = vst [vmem:[%s164_s30 + $0x20] sm:$0xff] %v237_v54  ;;  %246 = vst [vmem:[%s164_s30 + $0x28] sm:$0xff] %v238_v55 }
 0x131   : > { %247 = vst [vmem:[%s164_s30 + $0x30] sm:$0xff] %v239_v56  ;;  %248 = vst [vmem:[%s164_s30 + $0x38] sm:$0xff] %v240_v57 }
 0x132   : > { %401 = shalt.err (!%p398_p3)
}
 0x133   : > { %s402_s19 = scalar_lea.hbm %s547_s8, 1024  ;;  %s406_s25 = scalar_lea.hbm %s597_s3, 3072 }
 0x134   : > { %p403_p4 = scmp.ne.s32.totalorder %s547_s8, %s402_s19  ;;  %p407_p9 = scmp.lt.u32.totalorder %s547_s8, %s597_s3 }
 0x135   : > { %p408_p10 = scmp.lt.u32.totalorder %s406_s25, %s402_s19  ;;  %p410_p12 = scmp.lt.u32.totalorder %s402_s19, %s547_s8 }
 0x136   : > { %p404_p7 = pnand %p403_p4, %p514_p5 }
 0x137   : > { %p409_p11 = por %p408_p10, %p407_p9 }
 0x138   : > { %p405_p8 = pneg %p404_p7 }
 0x139   : > { %p411_p13 = por %p410_p12, %p409_p11 }
 0x13b   : > { %p412_p0 = pnand %p411_p13, %p405_p8 }
 0x13d   : > { %415 = shalt.err (!%p412_p0)
}
 0x13e   : > { %s454_s28 = smov 128   ;;  %s455_s29 = smov 8  }
 0x13f   : > { %344 = dma.vmem_to_hbm [thread:$0]  (%p514_p5), %s549_s4, 1024, %s547_s8, %s553_s16, %s454_s28, %s454_s28, %s455_s29  }
 0x140 PF: > { %p350_p1 = scmp.ge.s32.totalorder %s450_s15, 2  ;;  %s278_s30 = sand.u32 1, %s438_s12  }
 0x141   : > { %s279_s5 = scalar_lea.sflag [#allocation3], %s278_s30 }
 0x142   : > { %p347_p2 = pnand %p350_p1, %p518_p6 }
 0x144   : > { %433 = dma.done.wait (!%p347_p2), %s279_s5, 1024  }
 0x145   : > { %435 = vsyncadd (!%p347_p2), %s279_s5, 4294966272  ;;  %p13_p3 = scmp.ge.s32.totalorder %s501_s18, 5   ;;  %s600_s12 = smov %s442_s13 }
 0x146   : > { %s601_s13 = smov %s446_s14  ;;  %s602_s14 = smov %s512_s21 }
 0x147   : > { %s603_s15 = smov %s501_s18  ;;  %15 = sbr.rel (!%p13_p3) target bundleno = 3 (0x3), region = 67 }
 0x14e   :  { %284 = vsyncpa [#allocation3], 1 }
 0x14f   :  { %286 = vsyncpa [#allocation3 + $0x1], 1 }

// kernel: pairnorm.2
= control target key start
LH: loop header
LB: loop body
LE: loop exit
PB: predicated region body
PF: predicated region fallthrough
CT: control target
= control target key end

     0   :  { %8 = vsyncpa [#allocation3], 0  ;;  %s764_s0 = inlined_call_operand.hbm [shape: f32[192,128], index: 0, kind: input, shape index: {}]   ;;  %s765_s1 = inlined_call_operand.vmem [shape: f32[2,1,128], index: 1, kind: output, shape index: {0}]   ;;  %s766_s2 = inlined_call_operand.vmem [shape: f32[2,1,128], index: 2, kind: output, shape index: {1}]  }
   0x1   :  { %10 = vsyncpa [#allocation3 + $0x1], 0  ;;  %s593_s9 = smov 0   ;;  %s595_s10 = smov 0  }
   0x2   :  { %s597_s11 = smov 0   ;;  %s599_s12 = smov 0  }
   0x3   :  { %s601_s13 = smov 0   ;;  %s603_s14 = smov 0  }
   0x4   :  { %s605_s15 = smov 0   ;;  %s607_s16 = smov 0  }
   0x5 LB: > { %s384_s17 = sadd.s32 4294967295, %s572_s16   ;;  %s25_s18 = sadd.s32 1, %s564_s14  ;;  %s572_s16 = sphi %s607_s16, %s16_s16   ;;  %s568_s15 = sphi %s605_s15, %s776_s15   ;;  %s564_s14 = sphi %s603_s14, %s775_s14   ;;  %s560_s13 = sphi %s601_s13, %s774_s13   ;;  %s556_s12 = sphi %s599_s12, %s773_s12   ;;  %s552_s11 = sphi %s597_s11, %s772_s11   ;;  %s548_s10 = sphi %s595_s10, %s771_s10   ;;  %s544_s9 = sphi %s593_s9, %s770_s9  }
   0x6   : > { %p26_p0 = scmp.ge.s32.totalorder %s25_s18, 2  ;;  %s28_s19 = sadd.s32 1, %s568_s15 }
   0x7   : > { %s386_s20 = sshll.u32 %s568_s15, 1  ;;  %s43_s21 = sadd.s32 1, %s552_s11 }
   0x8   : > { %s778_s18 = smov (%p26_p0, %s25_s18), 0  ;;  %s780_s19 = smov (!%p26_p0, %s28_s19), %s568_s15 }
   0x9   : > { %s33_s22 = sadd.s32 %s564_s14, %s386_s20  ;;  %p50_p1 = scmp.ne.s32.totalorder %s552_s11, %s548_s10 }
   0xa   : > { %p30_p2 = scmp.ge.s32.totalorder %s780_s19, 2  ;;  %p34_p3 = scmp.lt.s32.totalorder %s33_s22, 2 }
   0xb   : > { %p51_p4 = scmp.eq.s32.totalorder %s572_s16, 0  ;;  %p56_p5 = scmp.ne.s32.totalorder %s548_s10, %s544_s9 }
   0xc   : > { %s782_s19 = smov (%p30_p2, %s780_s19), 0  ;;  %s784_s22 = smov (!%p34_p3, %s33_s22), 2 }
   0xd   : > { %s387_s23 = sshll.u32 %s782_s19, 1  ;;  %p647_p6 = por %p51_p4, %p50_p1 }
   0xe   : > { %s37_s25 = sadd.s32 %s387_s23, %s778_s18  ;;  %p57_p7 = scmp.eq.s32.totalorder %s384_s17, 0 }
   0xf   : > { %p38_p8 = scmp.lt.s32.totalorder %s37_s25, 2  ;;  %p408_p10 = scmp.lt.s32.totalorder %s572_s16, 4 }
  0x10   : > { %p652_p9 = por %p57_p7, %p56_p5  ;;  %s132_s27 = sand.u32 1, %s552_s11  }
  0x11   : > { %s786_s25 = smov (!%p38_p8, %s37_s25), 2  ;;  %s401_s28 = sshll.u32 %s784_s22, 10 }
  0x12   : > { %s40_s29 = ssub.s32 %s784_s22, %s786_s25  ;;  %s390_s30 = sshll.u32 %s132_s27, 6 }
  0x13   : > { %p41_p11 = scmp.eq.s32.totalorder %s40_s29, 0  ;;  %s661_s5 = scalar_lea.hbm %s764_s0, %s401_s28 }
  0x14   : > { %s136_s7 = scalar_lea.vmem [#allocation2], %s390_s30  ;;  %p668_p12 = pnand %p408_p10, %p647_p6 }
  0x15   : > { %s664_s6 = scalar_select %p41_p11, %s552_s11, %s43_s21  }
  0x16   : > { %s147_s8 = sshll.u32 %s136_s7, 4  ;;  %s674_s17 = scalar_lea.sflag [#allocation3], %s132_s27  ;;  %s672_s8 = int_to_ptr.vmem [resolvable:$true] %s147_s8 }
  0x17   : > { %s476_s20 = scalar_lea.hbm %s661_s5, 1024  ;;  %p478_p0 = pneg %p668_p12 }
  0x18   : > { %p477_p13 = scmp.ne.s32.totalorder %s661_s5, %s476_s20  ;;  %s481_s23 = scalar_lea.hbm %s764_s0, 3072 }
  0x19   : > { %p482_p3 = scmp.lt.u32.totalorder %s661_s5, %s764_s0  ;;  %p483_p4 = scmp.lt.u32.totalorder %s481_s23, %s476_s20 }
  0x1a   : > { %p479_p1 = pnand %p478_p0, %p477_p13  ;;  %p485_p6 = scmp.lt.u32.totalorder %s476_s20, %s661_s5 }
  0x1b   : > { %p484_p5 = por %p483_p4, %p482_p3 }
  0x1c   : > { %p480_p2 = pneg %p479_p1 }
  0x1d   : > { %p486_p7 = por %p485_p6, %p484_p5 }
  0x1f   : > { %p487_p8 = pnand %p486_p7, %p480_p2 }
  0x21   : > { %490 = shalt.err (!%p487_p8)
}
  0x22   : > { %s491_s27 = scalar_lea.vmem %s672_s8, 1024  ;;  %s574_s28 = smov [#allocation2]  }
  0x23   : > { %p492_p10 = scmp.ne.s32.totalorder %s672_s8, %s491_s27  ;;  %s496_s29 = sshll.u32 %s574_s28, 4  ;;  %s497_s29 = int_to_ptr.vmem [resolvable:$false] %s496_s29 }
  0x24   : > { %s498_s30 = scalar_lea.vmem %s497_s29, 2048  ;;  %p499_p1 = scmp.lt.s32.totalorder %s672_s8, %s497_s29 }
  0x25   : > { %p494_p11 = pnand %p492_p10, %p478_p0  ;;  %p500_p3 = scmp.lt.s32.totalorder %s498_s30, %s491_s27 }
  0x27   : > { %p495_p13 = pneg %p494_p11  ;;  %p501_p4 = por %p500_p3, %p499_p1 }
  0x29   : > { %p502_p5 = pnand %p501_p4, %p495_p13 }
  0x2b   : > { %505 = shalt.err (!%p502_p5)
}
  0x2c   : > { %s575_s3 = smov 128   ;;  %s576_s4 = smov 8  }
  0x2d   : > { %407 = dma.hbm_to_vmem [thread:$0]  (!%p668_p12), %s661_s5, 1024, %s672_s8, %s674_s17, %s575_s3, %s575_s3, %s576_s4  }
  0x2e   : > { %p394_p0 = scmp.ge.s32.totalorder %s572_s16, 1  ;;  %p155_p2 = scmp.lt.s32.totalorder %s572_s16, 5 }
  0x30   : > { %p156_p6 = pnand %p394_p0, %p155_p2 }
  0x31   : > { %s161_s7 = sand.u32 (!%p156_p6), 1, %s548_s10  }
  0x32   : > { %159 = sbr.rel (%p156_p6) target bundleno = 109 (0x6d), region = 24  ;;  %s395_s20 = sshll.u32 (!%p156_p6), %s161_s7, 6 }
  0x33   : > { %s162_s21 = scalar_lea.sflag (!%p156_p6), [#allocation3], %s161_s7  ;;  %s705_s22 = scalar_lea.vmem (!%p156_p6), [#allocation2], %s395_s20 }
  0x39   : > { %539 = dma.done.wait (%p652_p9), %s162_s21, 1024  }
  0x3a   : > { %541 = vsyncadd (%p652_p9), %s162_s21, 4294966272  ;;  %p192_p7 = scmp.lt.s32.totalorder %s560_s13, 1  ;;  %p396_p12 = scmp.ne.s32.totalorder %s556_s12, 0 }
  0x3b   : > { %v577_v0 = vmov (!%p396_p12), 0.0  }
  0x3c   : > { %s193_s5 = scalar_select %p192_p7, %s560_s13, 1 }
  0x3d   : > { %201 = sbr.rel (%p396_p12) target bundleno = 68 (0x44), region = 32 }
  0x3e   : > { %s716_s17 = scalar_lea.vmem %s765_s1, %s193_s5  ;;  %s721_s25 = scalar_lea.vmem %s766_s2, %s193_s5 }
  0x3f   : > { %202 = vst [vmem:[%s716_s17] sm:$0x1] (!%p396_p12), %v577_v0  ;;  %203 = vst [vmem:[%s721_s25] sm:$0x1] (!%p396_p12), %v577_v0 }
  0x44 PF: > { %s397_s26 = sshll.u32 %s560_s13, 1  ;;  %v207_v1 = vlaneseq  ;;  %v233_v15 = vld [vmem:[%s705_s22] sm:$0xff]  ;;  %v234_v17 = vld [vmem:[%s705_s22 + $0x8] sm:$0xff]  ;;  %v235_v18 = vld [vmem:[%s705_s22 + $0x10] sm:$0xff] }
  0x45   : > { %s205_s27 = sadd.s32 %s556_s12, %s397_s26  ;;  %v236_v20 = vld [vmem:[%s705_s22 + $0x18] sm:$0xff]  ;;  %v237_v23 = vld [vmem:[%s705_s22 + $0x20] sm:$0xff]  ;;  %v238_v29 = vld [vmem:[%s705_s22 + $0x28] sm:$0xff] }
  0x46   : > { %s398_s28 = sshll.u32 %s205_s27, 6  ;;  %v208_v2 = vshrl.u32 %v207_v1, 7  ;;  %v239_v35 = vld [vmem:[%s705_s22 + $0x30] sm:$0xff]  ;;  %v240_v40 = vld [vmem:[%s705_s22 + $0x38] sm:$0xff]  ;;  %v249_v1 = vld [vmem:[%s716_s17] sm:$0x1] }
  0x47   : > { %v216_v3 = vstv %s398_s28 }
  0x48   : > { %v209_v4 = vadd.s32 8, %v208_v2  ;;  %v210_v5 = vadd.s32 16, %v208_v2  ;;  %v211_v6 = vadd.s32 24, %v208_v2  ;;  %v212_v7 = vadd.s32 32, %v208_v2 }
  0x49   : > { %v213_v8 = vadd.s32 40, %v208_v2  ;;  %v214_v9 = vadd.s32 48, %v208_v2  ;;  %v217_v10 = vadd.s32 %v216_v3, %v208_v2  ;;  %v215_v16 = vadd.s32 56, %v208_v2 }
  0x4a   : > { %v218_v11 = vadd.s32 %v216_v3, %v209_v4  ;;  %v219_v12 = vadd.s32 %v216_v3, %v210_v5  ;;  %v220_v13 = vadd.s32 %v216_v3, %v211_v6  ;;  %v221_v14 = vadd.s32 %v216_v3, %v212_v7  ;;  %v265_v6 = vld [vmem:[%s721_s25] sm:$0x1] }
  0x4b   : > { %vm225_vm0 = vcmp.lt.s32.totalorder %v217_v10, 192  ;;  %v222_v19 = vadd.s32 %v216_v3, %v213_v8  ;;  %v223_v22 = vadd.s32 %v216_v3, %v214_v9  ;;  %v224_v26 = vadd.s32 %v216_v3, %v215_v16 }
  0x4c   : > { %vm226_vm1 = vcmp.lt.s32.totalorder %v218_v11, 192  ;;  %vm227_vm2 = vcmp.lt.s32.totalorder %v219_v12, 192  ;;  %vm228_vm3 = vcmp.lt.s32.totalorder %v220_v13, 192  ;;  %v241_v21 = vsel %vm225_vm0, %v233_v15, 0.0 }
  0x4d   : > { %vm229_vm4 = vcmp.lt.s32.totalorder %v221_v14, 192  ;;  %v242_v24 = vsel %vm226_vm1, %v234_v17, 0.0  ;;  %v243_v25 = vsel %vm227_vm2, %v235_v18, 0.0  ;;  %v244_v27 = vsel %vm228_vm3, %v236_v20, 0.0 }
  0x4e   : > { %v250_v28 = vadd.f32 %v242_v24, %v241_v21  ;;  %vm230_vm5 = vcmp.lt.s32.totalorder %v222_v19, 192  ;;  %v266_v30 = vmul.f32 %v241_v21, %v241_v21  ;;  %v267_v31 = vmul.f32 %v242_v24, %v242_v24 }
  0x4f   : > { %v268_v32 = vmul.f32 %v243_v25, %v243_v25  ;;  %v245_v33 = vsel %vm229_vm4, %v237_v23, 0.0  ;;  %vm231_vm6 = vcmp.lt.s32.totalorder %v223_v22, 192  ;;  %v269_v36 = vmul.f32 %v244_v27, %v244_v27 }
  0x50   : > { %v251_v34 = vadd.f32 %v250_v28, %v243_v25  ;;  %v274_v37 = vadd.f32 %v267_v31, %v266_v30  ;;  %v246_v38 = vsel %vm230_vm5, %v238_v29, 0.0  ;;  %vm232_vm7 = vcmp.lt.s32.totalorder %v224_v26, 192 }
  0x51   : > { %v270_v41 = vmul.f32 %v245_v33, %v245_v33  ;;  %v247_v43 = vsel %vm231_vm6, %v239_v35, 0.0  ;;  %v271_v45 = vmul.f32 %v246_v38, %v246_v38  ;;  %v248_v47 = vsel %vm232_vm7, %v240_v40, 0.0 }
  0x52   : > { %v252_v39 = vadd.f32 %v251_v34, %v244_v27  ;;  %v275_v42 = vadd.f32 %v274_v37, %v268_v32  ;;  %v272_v49 = vmul.f32 %v247_v43, %v247_v43  ;;  %v273_v52 = vmul.f32 %v248_v47, %v248_v47 }
  0x54   : > { %v253_v44 = vadd.f32 %v252_v39, %v245_v33  ;;  %v276_v46 = vadd.f32 %v275_v42, %v269_v36 }
  0x56   : > { %v254_v48 = vadd.f32 %v253_v44, %v246_v38  ;;  %v277_v50 = vadd.f32 %v276_v46, %v270_v41 }
  0x58   : > { %v255_v51 = vadd.f32 %v254_v48, %v247_v43  ;;  %v278_v53 = vadd.f32 %v277_v50, %v271_v45 }
  0x5a   : > { %v256_v54 = vadd.f32 %v255_v51, %v248_v47  ;;  %v279_v55 = vadd.f32 %v278_v53, %v272_v49 }
  0x5c   : > { %v257_v56 = vrot.slane %v256_v54, 4  ;;  %v280_v57 = vadd.f32 %v279_v55, %v273_v52 }
  0x5e   : > { %v258_v58 = vadd.f32 %v257_v56, %v256_v54  ;;  %v281_v59 = vrot.slane %v280_v57, 4 }
  0x60   : > { %v259_v60 = vrot.slane %v258_v58, 2  ;;  %v282_v61 = vadd.f32 %v281_v59, %v280_v57 }
  0x62   : > { %v260_v62 = vadd.f32 %v259_v60, %v258_v58  ;;  %v283_v63 = vrot.slane %v282_v61, 2 }
  0x64   : > { %v261_v0 = vrot.slane %v260_v62, 1  ;;  %v284_v2 = vadd.f32 %v283_v63, %v282_v61 }
  0x66   : > { %v262_v3 = vadd.f32 %v261_v0, %v260_v62  ;;  %v285_v4 = vrot.slane %v284_v2, 1 }
  0x68   : > { %v263_v5 = vadd.f32 %v262_v3, %v249_v1  ;;  %v286_v7 = vadd.f32 %v285_v4, %v284_v2 }
  0x6a   : > { %264 = vst [vmem:[%s716_s17] sm:$0x1] %v263_v5  ;;  %v287_v8 = vadd.f32 %v286_v7, %v265_v6 }
  0x6c   : > { %288 = vst [vmem:[%s721_s25] sm:$0x1] %v287_v8 }
  0x6d PF: > { %s16_s16 = sadd.s32 1, %s572_s16   ;;  %s770_s9 = smov %s548_s10 }
  0x6e   : > { %p13_p9 = scmp.ge.s32.totalorder %s16_s16, 6   ;;  %s771_s10 = smov %s552_s11 }
  0x6f   : > { %s772_s11 = smov %s664_s6  ;;  %s773_s12 = smov %s564_s14 }
  0x70   : > { %s774_s13 = smov %s568_s15  ;;  %s775_s14 = smov %s778_s18 }
  0x71   : > { %s776_s15 = smov %s782_s19  ;;  %15 = sbr.rel (!%p13_p9) target bundleno = 5 (0x5), region = 80 }
  0x78   :  { %318 = vsyncpa [#allocation3], 1 }
  0x79   :  { %320 = vsyncpa [#allocation3 + $0x1], 1 }

</bundles_post_ra>
